<compile_context>
chip_gen: v7x
topology: tpu7x:2x2x1
jax: 0.10.0
libtpu: 0.0.40
codegen_flags: <defaults>
</compile_context>

<pallas_src>
import functools

import jax
import jax.numpy as jnp
from jax.experimental import pallas as pl
from jax.experimental.pallas import tpu as pltpu

HIDDEN = 100          # fixed by the module definition
HIDDEN_PAD = 128      # padded hidden size (full MXU/VPU lanes)
NUM_SLOTS = 12        # 6 word ids + 6 pos ids


def _round_up(x, m):
    return ((x + m - 1) // m) * m


def _cdiv(a, b):
    return -(-a // b)


# --------------------------------------------------------------------------
# Kernel: fused (embedding lookup -> fc1) -> ReLU -> fc2 -> ReLU -> fc3 -> softmax
# --------------------------------------------------------------------------
def _word_pos_kernel(ids_ref, fw_ref, fp_ref, b1_ref, w2_ref, b2_ref,
                     w3_ref, b3_ref, out_ref):
    tb = ids_ref.shape[0]
    vw = fw_ref.shape[0] // 6          # padded word vocab
    vp = fp_ref.shape[0] // 6          # padded pos vocab

    ids = ids_ref[...]                 # [tb, 12] int32

    iota_w = jax.lax.broadcasted_iota(jnp.int32, (tb, vw), 1)
    iota_p = jax.lax.broadcasted_iota(jnp.int32, (tb, vp), 1)

    # fc1 fused with the embedding gather: the 12 slot one-hots are laid out
    # contiguously along the contraction axis and hit the MXU as two big
    # K = 6*Vpad bf16 matmuls against the W1-folded tables (f32 accumulation).
    oh_w = jnp.concatenate(
        [(ids[:, s:s + 1] == iota_w).astype(jnp.bfloat16) for s in range(6)],
        axis=1)                                                   # [tb, 6*vw]
    oh_p = jnp.concatenate(
        [(ids[:, 6 + s:7 + s] == iota_p).astype(jnp.bfloat16) for s in range(6)],
        axis=1)                                                   # [tb, 6*vp]

    h1 = (jnp.dot(oh_w, fw_ref[...], preferred_element_type=jnp.float32)
          + jnp.dot(oh_p, fp_ref[...], preferred_element_type=jnp.float32)
          + b1_ref[...])
    h1 = jnp.maximum(h1, 0.0)                                     # [tb, 128] f32

    h2 = jnp.dot(h1.astype(jnp.bfloat16), w2_ref[...],
                 preferred_element_type=jnp.float32) + b2_ref[...]
    h2 = jnp.maximum(h2, 0.0)                                     # [tb, 128] f32

    # Padded logit columns carry a -1e30 bias folded into b3, so no explicit
    # mask is needed before the softmax (padded w3 columns are zero).
    logits = jnp.dot(h2.astype(jnp.bfloat16), w3_ref[...],
                     preferred_element_type=jnp.float32) + b3_ref[...]

    m = jnp.max(logits, axis=-1, keepdims=True)
    e = jnp.exp(logits - m)
    denom = jnp.sum(e, axis=-1, keepdims=True)
    out_ref[...] = e * pl.reciprocal(denom, approx=True)


# --------------------------------------------------------------------------
# Parameter preparation (done once, outside the hot path)
# --------------------------------------------------------------------------
def prepare_kernel_params(params):
    """Fold fc1 into the embedding tables, pad to 128-lane shapes, cast bf16."""
    H, HP = HIDDEN, HIDDEN_PAD
    we = params["word_embedding"].astype(jnp.float32)     # [Vw, H]
    pe = params["pos_embedding"].astype(jnp.float32)      # [Vp, H]
    w1 = params["w1"].astype(jnp.float32)                 # [12H, H]
    b1 = params["b1"].astype(jnp.float32).reshape(1, -1)  # [1, H]
    w2 = params["w2"].astype(jnp.float32)                 # [H, H]
    b2 = params["b2"].astype(jnp.float32).reshape(1, -1)  # [1, H]
    w3 = params["w3"].astype(jnp.float32)                 # [H, O]
    b3 = params["b3"].astype(jnp.float32).reshape(1, -1)  # [1, O]

    vw, vp = we.shape[0], pe.shape[0]
    vw_pad = _round_up(vw, 128)
    vp_pad = _round_up(vp, 128)
    out_size = w3.shape[1]
    out_pad = _round_up(out_size, 128)

    # Feature layout is [word slot 0..5, pos slot 0..5], each H wide -> fold
    # the matching W1 row-block into each table, pad, and stack the 6 slots
    # along the contraction axis: [6*Vpad, HP].
    def fold(table, v_pad, first_slot):
        blocks = []
        for s in range(6):
            blk = table @ w1[(first_slot + s) * H:(first_slot + s + 1) * H, :]
            blk = jnp.pad(blk, ((0, v_pad - table.shape[0]), (0, HP - H)))
            blocks.append(blk)
        return jnp.concatenate(blocks, axis=0).astype(jnp.bfloat16)

    fw = fold(we, vw_pad, 0)                # [6*vw_pad, HP] bf16
    fp = fold(pe, vp_pad, 6)                # [6*vp_pad, HP] bf16

    b1p = jnp.pad(b1, ((0, 0), (0, HP - H)))                                    # f32
    w2p = jnp.pad(w2, ((0, HP - H), (0, HP - H))).astype(jnp.bfloat16)
    b2p = jnp.pad(b2, ((0, 0), (0, HP - H)))                                    # f32
    w3p = jnp.pad(w3, ((0, HP - H), (0, out_pad - out_size))).astype(jnp.bfloat16)
    # Fold the padded-column mask into b3: padded logits get -1e30 so they
    # vanish in the softmax with zero in-kernel masking work.
    b3p = jnp.pad(b3, ((0, 0), (0, out_pad - out_size)), constant_values=-1e30)  # f32

    return {
        "fw": fw, "fp": fp,
        "b1": b1p, "w2": w2p, "b2": b2p, "w3": w3p, "b3": b3p,
        "output_size": out_size,
    }


# --------------------------------------------------------------------------
# Forward wrapper
# --------------------------------------------------------------------------
def _choose_tile(batch, block_rows):
    """Batch tile: <= block_rows rows, multiple of 8, >= 2 grid steps whenever
    the batch allows (v7x megacore), and at most 7 rows of padding waste."""
    if batch <= 8:
        return 8
    n_tiles = max(2, _cdiv(batch, block_rows))
    return _round_up(_cdiv(batch, n_tiles), 8)


@functools.partial(jax.jit, static_argnames=("tb", "out_size"))
def _forward_impl(ids, fw, fp, b1, w2, b2, w3, b3, *, tb, out_size):
    batch = ids.shape[0]
    out_pad = w3.shape[1]
    batch_pad = _round_up(batch, tb)
    if batch_pad != batch:
        ids = jnp.pad(ids, ((0, batch_pad - batch), (0, 0)))   # id 0 is valid

    out = pl.pallas_call(
        _word_pos_kernel,
        out_shape=jax.ShapeDtypeStruct((batch_pad, out_pad), jnp.float32),
        grid=(batch_pad // tb,),
        in_specs=[
            pl.BlockSpec((tb, NUM_SLOTS), lambda i: (i, 0)),      # ids (tiled)
            # Weights / folded tables: constant index_maps keep them resident
            # across grid steps (no re-DMA).
            pl.BlockSpec(fw.shape, lambda i: (0, 0)),             # folded word tables
            pl.BlockSpec(fp.shape, lambda i: (0, 0)),             # folded pos tables
            pl.BlockSpec(b1.shape, lambda i: (0, 0)),             # b1
            pl.BlockSpec(w2.shape, lambda i: (0, 0)),             # w2
            pl.BlockSpec(b2.shape, lambda i: (0, 0)),             # b2
            pl.BlockSpec(w3.shape, lambda i: (0, 0)),             # w3
            pl.BlockSpec(b3.shape, lambda i: (0, 0)),             # b3 (mask folded in)
        ],
        out_specs=pl.BlockSpec((tb, out_pad), lambda i: (i, 0)),
        compiler_params=pltpu.CompilerParams(
            dimension_semantics=("parallel",),     # shards batch tiles over TCs
            vmem_limit_bytes=32 * 1024 * 1024,
        ),
    )(ids, fw, fp, b1, w2, b2, w3, b3)

    return out[:batch, :out_size]


def word_pos_forward(x, kparams, *, block_rows=1024, validate=False):
    """Forward pass equivalent to WordPOSModel.forward.

    x: int array [B, 12] (first 6 = word ids, last 6 = pos ids).
    kparams: output of prepare_kernel_params.
    Returns float32 array [B, output_size] of softmax probabilities.
    """
    if x.ndim != 2 or x.shape[1] != NUM_SLOTS:
        raise ValueError(f"Expected input shape [batch_size, 12], got {x.shape}")
    if validate:
        # Debug-only: forces a device->host round-trip; keep out of hot path.
        if bool(jnp.any(x < 0)):
            raise ValueError("Found negative IDs in input")

    tb = _choose_tile(x.shape[0], block_rows)
    return _forward_impl(x.astype(jnp.int32),
                         kparams["fw"], kparams["fp"], kparams["b1"],
                         kparams["w2"], kparams["b2"], kparams["w3"],
                         kparams["b3"], tb=tb, out_size=kparams["output_size"])


# --------------------------------------------------------------------------
# Parameter init (mirrors nn.Embedding / nn.Linear defaults) and reference
# --------------------------------------------------------------------------
def init_params(key, word_vocab_size, pos_vocab_size, output_size):
    ks = jax.random.split(key, 8)
    in1 = NUM_SLOTS * HIDDEN

    def linear_init(kw, kb, fan_in, fan_out):
        bound = 1.0 / jnp.sqrt(fan_in)
        w = jax.random.uniform(kw, (fan_in, fan_out), jnp.float32, -bound, bound)
        b = jax.random.uniform(kb, (1, fan_out), jnp.float32, -bound, bound)
        return w, b

    word_embedding = jax.random.normal(ks[0], (word_vocab_size, HIDDEN), jnp.float32)
    pos_embedding = jax.random.normal(ks[1], (pos_vocab_size, HIDDEN), jnp.float32)
    w1, b1 = linear_init(ks[2], ks[3], in1, HIDDEN)
    w2, b2 = linear_init(ks[4], ks[5], HIDDEN, HIDDEN)
    w3, b3 = linear_init(ks[6], ks[7], HIDDEN, output_size)
    return {
        "word_embedding": word_embedding, "pos_embedding": pos_embedding,
        "w1": w1, "b1": b1, "w2": w2, "b2": b2, "w3": w3, "b3": b3,
    }


def _reference_forward(x, kparams):
    """Matched-precision pure-JAX reference (same folded bf16 params)."""
    ids = x.astype(jnp.int32)
    hp = HIDDEN_PAD
    vw = kparams["fw"].shape[0] // 6
    vp = kparams["fp"].shape[0] // 6
    fw = kparams["fw"].astype(jnp.float32).reshape(6, vw, hp)
    fp = kparams["fp"].astype(jnp.float32).reshape(6, vp, hp)
    h = jnp.zeros((x.shape[0], hp), jnp.float32) + kparams["b1"]
    for s in range(6):
        h = h + fw[s][ids[:, s]]
    for s in range(6):
        h = h + fp[s][ids[:, 6 + s]]
    h1 = jnp.maximum(h, 0.0)
    h2 = jnp.maximum(
        jnp.dot(h1.astype(jnp.bfloat16).astype(jnp.float32),
                kparams["w2"].astype(jnp.float32)) + kparams["b2"], 0.0)
    logits = jnp.dot(h2.astype(jnp.bfloat16).astype(jnp.float32),
                     kparams["w3"].astype(jnp.float32)) + kparams["b3"]
    out_size = kparams["output_size"]
    return jax.nn.softmax(logits[:, :out_size], axis=-1)


if __name__ == "__main__":
    key = jax.random.PRNGKey(0)
    k_params, k_word, k_pos = jax.random.split(key, 3)

    word_vocab_size = 50
    pos_vocab_size = 20
    output_size = 16
    batch_size = 8

    params = init_params(k_params, word_vocab_size, pos_vocab_size, output_size)
    kparams = prepare_kernel_params(params)

    word_ids = jax.random.randint(k_word, (batch_size, 6), 0, word_vocab_size,
                                  dtype=jnp.int32)
    pos_ids = jax.random.randint(k_pos, (batch_size, 6), 0, pos_vocab_size,
                                 dtype=jnp.int32)
    x = jnp.concatenate([word_ids, pos_ids], axis=1)   # [B, 12], non-negative

    out = word_pos_forward(x, kparams)
    out = jax.block_until_ready(out)

    ref = _reference_forward(x, kparams)
    assert out.shape == (batch_size, output_size)
    assert jnp.allclose(jnp.sum(out, axis=-1), 1.0, atol=1e-2)
    assert jnp.allclose(out, ref, atol=1e-2)

    print("KERNEL_OK")
</pallas_src>

<mosaic_0001>
module attributes {stable_mosaic.version = 11 : i64} {
  func.func @_word_pos_kernel(%arg0: i32, %arg1: memref<8x12xi32, #tpu.memory_space<vmem>>, %arg2: memref<768x128xbf16, #tpu.memory_space<vmem>>, %arg3: memref<768x128xbf16, #tpu.memory_space<vmem>>, %arg4: memref<1x128xf32, #tpu.memory_space<vmem>>, %arg5: memref<128x128xbf16, #tpu.memory_space<vmem>>, %arg6: memref<1x128xf32, #tpu.memory_space<vmem>>, %arg7: memref<128x128xbf16, #tpu.memory_space<vmem>>, %arg8: memref<1x128xf32, #tpu.memory_space<vmem>>, %arg9: memref<8x128xf32, #tpu.memory_space<vmem>>) attributes {dimension_semantics = [#tpu.dimension_semantics<parallel>], iteration_bounds = array<i64: 1>, scalar_prefetch = 0 : i64, scratch_operands = 0 : i64, tpu.core_type = #tpu.core_type<tc>, window_params = [{transform_indices = @transform_0, window_bounds = array<i64: 8, 12>}, {pipeline_mode = #tpu.pipeline_mode<synchronous>, transform_indices = @transform_1, window_bounds = array<i64: 768, 128>}, {pipeline_mode = #tpu.pipeline_mode<synchronous>, transform_indices = @transform_2, window_bounds = array<i64: 768, 128>}, {pipeline_mode = #tpu.pipeline_mode<synchronous>, transform_indices = @transform_3, window_bounds = array<i64: 1, 128>}, {pipeline_mode = #tpu.pipeline_mode<synchronous>, transform_indices = @transform_4, window_bounds = array<i64: 128, 128>}, {pipeline_mode = #tpu.pipeline_mode<synchronous>, transform_indices = @transform_5, window_bounds = array<i64: 1, 128>}, {pipeline_mode = #tpu.pipeline_mode<synchronous>, transform_indices = @transform_6, window_bounds = array<i64: 128, 128>}, {pipeline_mode = #tpu.pipeline_mode<synchronous>, transform_indices = @transform_7, window_bounds = array<i64: 1, 128>}, {transform_indices = @transform_8, window_bounds = array<i64: 8, 128>}]} {
    %c0 = arith.constant 0 : index
    %c0_0 = arith.constant 0 : index
    %0 = vector.load %arg1[%c0, %c0_0] : memref<8x12xi32, #tpu.memory_space<vmem>>, vector<8x12xi32>
    %1 = tpu.iota {dimensions = array<i32: 1>} : vector<8x128xi32>
    %2 = tpu.iota {dimensions = array<i32: 1>} : vector<8x128xi32>
    %3 = vector.extract_strided_slice %0 {offsets = [0, 0], sizes = [8, 1], strides = [1, 1]} : vector<8x12xi32> to vector<8x1xi32>
    %4 = vector.broadcast %3 : vector<8x1xi32> to vector<8x128xi32>
    %5 = arith.cmpi eq, %4, %1 : vector<8x128xi32>
    %6 = arith.extui %5 : vector<8x128xi1> to vector<8x128xi32>
    %7 = arith.sitofp %6 : vector<8x128xi32> to vector<8x128xf32>
    %8 = arith.truncf %7 : vector<8x128xf32> to vector<8x128xbf16>
    %9 = vector.extract_strided_slice %0 {offsets = [0, 1], sizes = [8, 1], strides = [1, 1]} : vector<8x12xi32> to vector<8x1xi32>
    %10 = vector.broadcast %9 : vector<8x1xi32> to vector<8x128xi32>
    %11 = arith.cmpi eq, %10, %1 : vector<8x128xi32>
    %12 = arith.extui %11 : vector<8x128xi1> to vector<8x128xi32>
    %13 = arith.sitofp %12 : vector<8x128xi32> to vector<8x128xf32>
    %14 = arith.truncf %13 : vector<8x128xf32> to vector<8x128xbf16>
    %15 = vector.extract_strided_slice %0 {offsets = [0, 2], sizes = [8, 1], strides = [1, 1]} : vector<8x12xi32> to vector<8x1xi32>
    %16 = vector.broadcast %15 : vector<8x1xi32> to vector<8x128xi32>
    %17 = arith.cmpi eq, %16, %1 : vector<8x128xi32>
    %18 = arith.extui %17 : vector<8x128xi1> to vector<8x128xi32>
    %19 = arith.sitofp %18 : vector<8x128xi32> to vector<8x128xf32>
    %20 = arith.truncf %19 : vector<8x128xf32> to vector<8x128xbf16>
    %21 = vector.extract_strided_slice %0 {offsets = [0, 3], sizes = [8, 1], strides = [1, 1]} : vector<8x12xi32> to vector<8x1xi32>
    %22 = vector.broadcast %21 : vector<8x1xi32> to vector<8x128xi32>
    %23 = arith.cmpi eq, %22, %1 : vector<8x128xi32>
    %24 = arith.extui %23 : vector<8x128xi1> to vector<8x128xi32>
    %25 = arith.sitofp %24 : vector<8x128xi32> to vector<8x128xf32>
    %26 = arith.truncf %25 : vector<8x128xf32> to vector<8x128xbf16>
    %27 = vector.extract_strided_slice %0 {offsets = [0, 4], sizes = [8, 1], strides = [1, 1]} : vector<8x12xi32> to vector<8x1xi32>
    %28 = vector.broadcast %27 : vector<8x1xi32> to vector<8x128xi32>
    %29 = arith.cmpi eq, %28, %1 : vector<8x128xi32>
    %30 = arith.extui %29 : vector<8x128xi1> to vector<8x128xi32>
    %31 = arith.sitofp %30 : vector<8x128xi32> to vector<8x128xf32>
    %32 = arith.truncf %31 : vector<8x128xf32> to vector<8x128xbf16>
    %33 = vector.extract_strided_slice %0 {offsets = [0, 5], sizes = [8, 1], strides = [1, 1]} : vector<8x12xi32> to vector<8x1xi32>
    %34 = vector.broadcast %33 : vector<8x1xi32> to vector<8x128xi32>
    %35 = arith.cmpi eq, %34, %1 : vector<8x128xi32>
    %36 = arith.extui %35 : vector<8x128xi1> to vector<8x128xi32>
    %37 = arith.sitofp %36 : vector<8x128xi32> to vector<8x128xf32>
    %38 = arith.truncf %37 : vector<8x128xf32> to vector<8x128xbf16>
    %39 = tpu.concatenate %8, %14, %20, %26, %32, %38 in 1 : vector<8x128xbf16>, vector<8x128xbf16>, vector<8x128xbf16>, vector<8x128xbf16>, vector<8x128xbf16>, vector<8x128xbf16> -> vector<8x768xbf16>
    %40 = vector.extract_strided_slice %0 {offsets = [0, 6], sizes = [8, 1], strides = [1, 1]} : vector<8x12xi32> to vector<8x1xi32>
    %41 = vector.broadcast %40 : vector<8x1xi32> to vector<8x128xi32>
    %42 = arith.cmpi eq, %41, %2 : vector<8x128xi32>
    %43 = arith.extui %42 : vector<8x128xi1> to vector<8x128xi32>
    %44 = arith.sitofp %43 : vector<8x128xi32> to vector<8x128xf32>
    %45 = arith.truncf %44 : vector<8x128xf32> to vector<8x128xbf16>
    %46 = vector.extract_strided_slice %0 {offsets = [0, 7], sizes = [8, 1], strides = [1, 1]} : vector<8x12xi32> to vector<8x1xi32>
    %47 = vector.broadcast %46 : vector<8x1xi32> to vector<8x128xi32>
    %48 = arith.cmpi eq, %47, %2 : vector<8x128xi32>
    %49 = arith.extui %48 : vector<8x128xi1> to vector<8x128xi32>
    %50 = arith.sitofp %49 : vector<8x128xi32> to vector<8x128xf32>
    %51 = arith.truncf %50 : vector<8x128xf32> to vector<8x128xbf16>
    %52 = vector.extract_strided_slice %0 {offsets = [0, 8], sizes = [8, 1], strides = [1, 1]} : vector<8x12xi32> to vector<8x1xi32>
    %53 = vector.broadcast %52 : vector<8x1xi32> to vector<8x128xi32>
    %54 = arith.cmpi eq, %53, %2 : vector<8x128xi32>
    %55 = arith.extui %54 : vector<8x128xi1> to vector<8x128xi32>
    %56 = arith.sitofp %55 : vector<8x128xi32> to vector<8x128xf32>
    %57 = arith.truncf %56 : vector<8x128xf32> to vector<8x128xbf16>
    %58 = vector.extract_strided_slice %0 {offsets = [0, 9], sizes = [8, 1], strides = [1, 1]} : vector<8x12xi32> to vector<8x1xi32>
    %59 = vector.broadcast %58 : vector<8x1xi32> to vector<8x128xi32>
    %60 = arith.cmpi eq, %59, %2 : vector<8x128xi32>
    %61 = arith.extui %60 : vector<8x128xi1> to vector<8x128xi32>
    %62 = arith.sitofp %61 : vector<8x128xi32> to vector<8x128xf32>
    %63 = arith.truncf %62 : vector<8x128xf32> to vector<8x128xbf16>
    %64 = vector.extract_strided_slice %0 {offsets = [0, 10], sizes = [8, 1], strides = [1, 1]} : vector<8x12xi32> to vector<8x1xi32>
    %65 = vector.broadcast %64 : vector<8x1xi32> to vector<8x128xi32>
    %66 = arith.cmpi eq, %65, %2 : vector<8x128xi32>
    %67 = arith.extui %66 : vector<8x128xi1> to vector<8x128xi32>
    %68 = arith.sitofp %67 : vector<8x128xi32> to vector<8x128xf32>
    %69 = arith.truncf %68 : vector<8x128xf32> to vector<8x128xbf16>
    %70 = vector.extract_strided_slice %0 {offsets = [0, 11], sizes = [8, 1], strides = [1, 1]} : vector<8x12xi32> to vector<8x1xi32>
    %71 = vector.broadcast %70 : vector<8x1xi32> to vector<8x128xi32>
    %72 = arith.cmpi eq, %71, %2 : vector<8x128xi32>
    %73 = arith.extui %72 : vector<8x128xi1> to vector<8x128xi32>
    %74 = arith.sitofp %73 : vector<8x128xi32> to vector<8x128xf32>
    %75 = arith.truncf %74 : vector<8x128xf32> to vector<8x128xbf16>
    %76 = tpu.concatenate %45, %51, %57, %63, %69, %75 in 1 : vector<8x128xbf16>, vector<8x128xbf16>, vector<8x128xbf16>, vector<8x128xbf16>, vector<8x128xbf16>, vector<8x128xbf16> -> vector<8x768xbf16>
    %c0_1 = arith.constant 0 : index
    %c0_2 = arith.constant 0 : index
    %77 = vector.load %arg2[%c0_1, %c0_2] : memref<768x128xbf16, #tpu.memory_space<vmem>>, vector<768x128xbf16>
    %cst = arith.constant dense<0.000000e+00> : vector<8x128xf32>
    %78 = tpu.matmul %39, %77, %cst {dimension_numbers = #tpu.dot_dimension_numbers<[1], [0], [0], [1], [0, 0, 1, 1], [], []>} : vector<8x768xbf16>, vector<768x128xbf16>, vector<8x128xf32> -> vector<8x128xf32>
    %c0_3 = arith.constant 0 : index
    %c0_4 = arith.constant 0 : index
    %79 = vector.load %arg3[%c0_3, %c0_4] : memref<768x128xbf16, #tpu.memory_space<vmem>>, vector<768x128xbf16>
    %cst_5 = arith.constant dense<0.000000e+00> : vector<8x128xf32>
    %80 = tpu.matmul %76, %79, %cst_5 {dimension_numbers = #tpu.dot_dimension_numbers<[1], [0], [0], [1], [0, 0, 1, 1], [], []>} : vector<8x768xbf16>, vector<768x128xbf16>, vector<8x128xf32> -> vector<8x128xf32>
    %81 = arith.addf %78, %80 : vector<8x128xf32>
    %c0_6 = arith.constant 0 : index
    %c0_7 = arith.constant 0 : index
    %82 = vector.load %arg4[%c0_6, %c0_7] : memref<1x128xf32, #tpu.memory_space<vmem>>, vector<1x128xf32>
    %83 = vector.broadcast %82 : vector<1x128xf32> to vector<8x128xf32>
    %84 = arith.addf %81, %83 : vector<8x128xf32>
    %cst_8 = arith.constant 0.000000e+00 : f32
    %85 = vector.broadcast %cst_8 : f32 to vector<8x128xf32>
    %86 = arith.maximumf %84, %85 : vector<8x128xf32>
    %87 = arith.truncf %86 : vector<8x128xf32> to vector<8x128xbf16>
    %c0_9 = arith.constant 0 : index
    %c0_10 = arith.constant 0 : index
    %88 = vector.load %arg5[%c0_9, %c0_10] : memref<128x128xbf16, #tpu.memory_space<vmem>>, vector<128x128xbf16>
    %cst_11 = arith.constant dense<0.000000e+00> : vector<8x128xf32>
    %89 = tpu.matmul %87, %88, %cst_11 {dimension_numbers = #tpu.dot_dimension_numbers<[1], [0], [0], [1], [0, 0, 1, 1], [], []>} : vector<8x128xbf16>, vector<128x128xbf16>, vector<8x128xf32> -> vector<8x128xf32>
    %c0_12 = arith.constant 0 : index
    %c0_13 = arith.constant 0 : index
    %90 = vector.load %arg6[%c0_12, %c0_13] : memref<1x128xf32, #tpu.memory_space<vmem>>, vector<1x128xf32>
    %91 = vector.broadcast %90 : vector<1x128xf32> to vector<8x128xf32>
    %92 = arith.addf %89, %91 : vector<8x128xf32>
    %cst_14 = arith.constant 0.000000e+00 : f32
    %93 = vector.broadcast %cst_14 : f32 to vector<8x128xf32>
    %94 = arith.maximumf %92, %93 : vector<8x128xf32>
    %95 = arith.truncf %94 : vector<8x128xf32> to vector<8x128xbf16>
    %c0_15 = arith.constant 0 : index
    %c0_16 = arith.constant 0 : index
    %96 = vector.load %arg7[%c0_15, %c0_16] : memref<128x128xbf16, #tpu.memory_space<vmem>>, vector<128x128xbf16>
    %cst_17 = arith.constant dense<0.000000e+00> : vector<8x128xf32>
    %97 = tpu.matmul %95, %96, %cst_17 {dimension_numbers = #tpu.dot_dimension_numbers<[1], [0], [0], [1], [0, 0, 1, 1], [], []>} : vector<8x128xbf16>, vector<128x128xbf16>, vector<8x128xf32> -> vector<8x128xf32>
    %c0_18 = arith.constant 0 : index
    %c0_19 = arith.constant 0 : index
    %98 = vector.load %arg8[%c0_18, %c0_19] : memref<1x128xf32, #tpu.memory_space<vmem>>, vector<1x128xf32>
    %99 = vector.broadcast %98 : vector<1x128xf32> to vector<8x128xf32>
    %100 = arith.addf %97, %99 : vector<8x128xf32>
    %cst_20 = arith.constant dense<0xFF800000> : vector<8xf32>
    %101 = vector.multi_reduction <maximumf>, %100, %cst_20 [1] : vector<8x128xf32> to vector<8xf32>
    %102 = vector.shape_cast %101 : vector<8xf32> to vector<8x1xf32>
    %103 = vector.broadcast %102 : vector<8x1xf32> to vector<8x128xf32>
    %104 = arith.subf %100, %103 : vector<8x128xf32>
    %105 = math.exp %104 : vector<8x128xf32>
    %cst_21 = arith.constant dense<0.000000e+00> : vector<8xf32>
    %106 = vector.multi_reduction <add>, %105, %cst_21 [1] : vector<8x128xf32> to vector<8xf32>
    %107 = vector.shape_cast %106 : vector<8xf32> to vector<8x1xf32>
    %108 = tpu.reciprocal %107 {approx = true} : vector<8x1xf32> -> vector<8x1xf32>
    %109 = vector.broadcast %108 : vector<8x1xf32> to vector<8x128xf32>
    %110 = arith.mulf %105, %109 : vector<8x128xf32>
    %c0_22 = arith.constant 0 : index
    %c0_23 = arith.constant 0 : index
    %111 = vector.load %arg9[%c0_22, %c0_23] : memref<8x128xf32, #tpu.memory_space<vmem>>, vector<8x128xf32>
    tpu.vector_store %arg9[%c0_22, %c0_23], %110 {strides = array<i32>} : memref<8x128xf32, #tpu.memory_space<vmem>>, vector<8x128xf32>,
    return
  }
  func.func @transform_0(%arg0: i32) -> (i32, i32) {
    %c0_i32 = arith.constant 0 : i32
    %c0_i32_0 = arith.constant 0 : i32
    return %arg0, %c0_i32 : i32, i32
  }
  func.func @transform_1(%arg0: i32) -> (i32, i32) {
    %c0_i32 = arith.constant 0 : i32
    %c0_i32_0 = arith.constant 0 : i32
    %c0_i32_1 = arith.constant 0 : i32
    return %c0_i32, %c0_i32_0 : i32, i32
  }
  func.func @transform_2(%arg0: i32) -> (i32, i32) {
    %c0_i32 = arith.constant 0 : i32
    %c0_i32_0 = arith.constant 0 : i32
    %c0_i32_1 = arith.constant 0 : i32
    return %c0_i32, %c0_i32_0 : i32, i32
  }
  func.func @transform_3(%arg0: i32) -> (i32, i32) {
    %c0_i32 = arith.constant 0 : i32
    %c0_i32_0 = arith.constant 0 : i32
    %c0_i32_1 = arith.constant 0 : i32
    return %c0_i32, %c0_i32_0 : i32, i32
  }
  func.func @transform_4(%arg0: i32) -> (i32, i32) {
    %c0_i32 = arith.constant 0 : i32
    %c0_i32_0 = arith.constant 0 : i32
    %c0_i32_1 = arith.constant 0 : i32
    return %c0_i32, %c0_i32_0 : i32, i32
  }
  func.func @transform_5(%arg0: i32) -> (i32, i32) {
    %c0_i32 = arith.constant 0 : i32
    %c0_i32_0 = arith.constant 0 : i32
    %c0_i32_1 = arith.constant 0 : i32
    return %c0_i32, %c0_i32_0 : i32, i32
  }
  func.func @transform_6(%arg0: i32) -> (i32, i32) {
    %c0_i32 = arith.constant 0 : i32
    %c0_i32_0 = arith.constant 0 : i32
    %c0_i32_1 = arith.constant 0 : i32
    return %c0_i32, %c0_i32_0 : i32, i32
  }
  func.func @transform_7(%arg0: i32) -> (i32, i32) {
    %c0_i32 = arith.constant 0 : i32
    %c0_i32_0 = arith.constant 0 : i32
    %c0_i32_1 = arith.constant 0 : i32
    return %c0_i32, %c0_i32_0 : i32, i32
  }
  func.func @transform_8(%arg0: i32) -> (i32, i32) {
    %c0_i32 = arith.constant 0 : i32
    %c0_i32_0 = arith.constant 0 : i32
    return %arg0, %c0_i32 : i32, i32
  }
}

</mosaic_0001>

<bundles_post_ra>
// kernel: _forward_impl.1
= control target key start
LH: loop header
LB: loop body
LE: loop exit
PB: predicated region body
PF: predicated region fallthrough
CT: control target
= control target key end

     0   :  { %13 = vsyncpa [#allocation3], 0  ;;  %s2308_s0 = inlined_call_operand.hbm [shape: s32[8,12], index: 0, kind: input, shape index: {}]   ;;  %s2309_s1 = inlined_call_operand.hbm [shape: bf16[768,128], index: 1, kind: input, shape index: {}]   ;;  %s2310_s2 = inlined_call_operand.hbm [shape: bf16[768,128], index: 2, kind: input, shape index: {}]   ;;  %s2311_s3 = inlined_call_operand.vmem [shape: f32[1,128], index: 3, kind: input, shape index: {}]   ;;  %s2312_s4 = inlined_call_operand.hbm [shape: bf16[128,128], index: 4, kind: input, shape index: {}]   ;;  %s2313_s5 = inlined_call_operand.vmem [shape: f32[1,128], index: 5, kind: input, shape index: {}]   ;;  %s2314_s6 = inlined_call_operand.hbm [shape: bf16[128,128], index: 6, kind: input, shape index: {}]   ;;  %s2315_s7 = inlined_call_operand.vmem [shape: f32[1,128], index: 7, kind: input, shape index: {}]   ;;  %s2316_s8 = inlined_call_operand.hbm [shape: f32[8,128], index: 8, kind: output, shape index: {}]  }
   0x1   :  { %14 = vsyncpa [#allocation6], 0 }
   0x2   :  { %15 = vsyncpa [#allocation9], 0 }
   0x3   :  { %16 = vsyncpa [#allocation4], 0  ;;  %s2086_s27 = smov [#allocation5]   ;;  %s1946_s9 = scalar_lea.hbm %s2309_s1, 6144 }
   0x4   :  { %s32_s28 = sshll.u32 %s2086_s27, 4  ;;  %p1947_p0 = scmp.ne.s32.totalorder %s2309_s1, %s1946_s9  ;;  %s33_s28 = int_to_ptr.vmem [resolvable:$true] %s32_s28 }
   0x5   :  { %p1950_p1 = scmp.lt.u32.totalorder %s1946_s9, %s2309_s1 }
   0x7   :  { %p1952_p2 = pnand %p1950_p1, %p1947_p0 }
   0x9   :  { %1955 = shalt.err (!%p1952_p2)
}
   0xa   :  { %s1956_s14 = scalar_lea.vmem %s33_s28, 6144  ;;  %p1961_p4 = scmp.lt.s32.totalorder %s33_s28, %s33_s28 }
   0xb   :  { %p1957_p3 = scmp.ne.s32.totalorder %s33_s28, %s1956_s14  ;;  %p1962_p5 = scmp.lt.s32.totalorder %s1956_s14, %s1956_s14 }
   0xd   :  { %p1963_p6 = por %p1962_p5, %p1961_p4 }
   0xf   :  { %p1964_p7 = pnand %p1963_p6, %p1957_p3 }
  0x11   :  { %1967 = shalt.err (!%p1964_p7)
}
  0x12   :  { %s2087_s15 = smov 64   ;;  %s2088_s16 = smov 4  }
  0x13   :  { %38 = dma.hbm_to_vmem [thread:$0]  %s2309_s1, 6144, %s33_s28, [#allocation6], %s2087_s15, %s2087_s15, %s2088_s16  }
  0x14   :  { %s2089_s19 = smov [#allocation8]   ;;  %s2090_s21 = smov [#allocation2]  }
  0x15   :  { %s58_s20 = sshll.u32 %s2089_s19, 4  ;;  %s23_s22 = sshll.u32 %s2090_s21, 4  ;;  %s59_s20 = int_to_ptr.vmem [resolvable:$true] %s58_s20  ;;  %s24_s22 = int_to_ptr.vmem [resolvable:$true] %s23_s22 }
  0x16   :  { %s1968_s25 = scalar_lea.hbm %s2312_s4, 1024 }
  0x17   :  { %p1969_p8 = scmp.ne.s32.totalorder %s2312_s4, %s1968_s25  ;;  %p1972_p9 = scmp.lt.u32.totalorder %s1968_s25, %s2312_s4 }
  0x19   :  { %p1974_p10 = pnand %p1972_p9, %p1969_p8 }
  0x1b   :  { %1977 = shalt.err (!%p1974_p10)
}
  0x1c   :  { %s1978_s1 = scalar_lea.vmem %s59_s20, 1024  ;;  %p1983_p12 = scmp.lt.s32.totalorder %s59_s20, %s59_s20 }
  0x1d   :  { %p1979_p11 = scmp.ne.s32.totalorder %s59_s20, %s1978_s1  ;;  %p1984_p13 = scmp.lt.s32.totalorder %s1978_s1, %s1978_s1 }
  0x1f   :  { %p1985_p0 = por %p1984_p13, %p1983_p12 }
  0x21   :  { %p1986_p1 = pnand %p1985_p0, %p1979_p11 }
  0x23   :  { %1989 = shalt.err (!%p1986_p1)
}
  0x24   :  { %64 = dma.hbm_to_vmem [thread:$0]  %s2312_s4, 1024, %s59_s20, [#allocation9], %s2087_s15, %s2087_s15, %s2088_s16  }
  0x25   :  { %s1990_s12 = scalar_lea.hbm %s2308_s0, 128 }
  0x26   :  { %p1991_p2 = scmp.ne.s32.totalorder %s2308_s0, %s1990_s12  ;;  %p1994_p3 = scmp.lt.u32.totalorder %s1990_s12, %s2308_s0 }
  0x28   :  { %p1996_p4 = pnand %p1994_p3, %p1991_p2 }
  0x2a   :  { %1999 = shalt.err (!%p1996_p4)
}
  0x2b   :  { %s2000_s19 = scalar_lea.vmem %s24_s22, 128  ;;  %p2005_p6 = scmp.lt.s32.totalorder %s24_s22, %s24_s22 }
  0x2c   :  { %p2001_p5 = scmp.ne.s32.totalorder %s24_s22, %s2000_s19  ;;  %p2006_p7 = scmp.lt.s32.totalorder %s2000_s19, %s2000_s19 }
  0x2e   :  { %p2007_p8 = por %p2006_p7, %p2005_p6 }
  0x30   :  { %p2008_p9 = pnand %p2007_p8, %p2001_p5 }
  0x32   :  { %2011 = shalt.err (!%p2008_p9)
}
  0x33   :  { %26 = dma.hbm_to_vmem [thread:$0]  %s2308_s0, 128, %s24_s22, [#allocation3]  }
  0x34   :  { %s2091_s21 = smov [#allocation7]   ;;  %s2092_s24 = smov [#allocation10]  }
  0x35   :  { %s44_s23 = sshll.u32 %s2091_s21, 4  ;;  %s72_s25 = sshll.u32 %s2092_s24, 4  ;;  %s45_s23 = int_to_ptr.vmem [resolvable:$true] %s44_s23  ;;  %s73_s25 = int_to_ptr.vmem [resolvable:$true] %s72_s25 }
  0x36   :  { %s2012_s29 = scalar_lea.hbm %s2310_s2, 6144 }
  0x37   :  { %p2013_p10 = scmp.ne.s32.totalorder %s2310_s2, %s2012_s29  ;;  %p2016_p11 = scmp.lt.u32.totalorder %s2012_s29, %s2310_s2 }
  0x39   :  { %p2018_p12 = pnand %p2016_p11, %p2013_p10 }
  0x3b   :  { %2021 = shalt.err (!%p2018_p12)
}
  0x3c   :  { %s2022_s0 = scalar_lea.vmem %s45_s23, 6144  ;;  %p2027_p0 = scmp.lt.s32.totalorder %s45_s23, %s45_s23 }
  0x3d   :  { %p2023_p13 = scmp.ne.s32.totalorder %s45_s23, %s2022_s0  ;;  %p2028_p1 = scmp.lt.s32.totalorder %s2022_s0, %s2022_s0 }
  0x3f   :  { %p2029_p2 = por %p2028_p1, %p2027_p0 }
  0x41   :  { %p2030_p3 = pnand %p2029_p2, %p2023_p13 }
  0x43   :  { %2033 = shalt.err (!%p2030_p3)
}
  0x44   :  { %50 = dma.hbm_to_vmem [thread:$0]  %s2310_s2, 6144, %s45_s23, [#allocation6], %s2087_s15, %s2087_s15, %s2088_s16  }
  0x45   :  { %s2034_s13 = scalar_lea.hbm %s2314_s6, 1024 }
  0x46   :  { %p2035_p4 = scmp.ne.s32.totalorder %s2314_s6, %s2034_s13  ;;  %p2038_p5 = scmp.lt.u32.totalorder %s2034_s13, %s2314_s6 }
  0x48   :  { %p2040_p6 = pnand %p2038_p5, %p2035_p4 }
  0x4a   :  { %2043 = shalt.err (!%p2040_p6)
}
  0x4b   :  { %s2044_s4 = scalar_lea.vmem %s73_s25, 1024  ;;  %p2049_p8 = scmp.lt.s32.totalorder %s73_s25, %s73_s25 }
  0x4c   :  { %p2045_p7 = scmp.ne.s32.totalorder %s73_s25, %s2044_s4  ;;  %p2050_p9 = scmp.lt.s32.totalorder %s2044_s4, %s2044_s4 }
  0x4e   :  { %p2051_p10 = por %p2050_p9, %p2049_p8 }
  0x50   :  { %p2052_p11 = pnand %p2051_p10, %p2045_p7 }
  0x52   :  { %2055 = shalt.err (!%p2052_p11)
}
  0x53   :  { %78 = dma.hbm_to_vmem [thread:$0]  %s2314_s6, 1024, %s73_s25, [#allocation9], %s2087_s15, %s2087_s15, %s2088_s16  }
  0x54   :  { %2078 = dma.done.wait [#allocation3], 128  }
  0x55   :  { %2079 = vsyncadd [#allocation3], 4294967168 }
  0x56   :  { %2080 = dma.done.wait [#allocation6], 12288  }
  0x57   :  { %2081 = vsyncadd [#allocation6], 4294955008 }
  0x58   :  { %2082 = dma.done.wait [#allocation9], 2048  }
  0x59   :  { %2083 = vsyncadd [#allocation9], 4294965248  ;;  %v2093_v0 = vmov 9   ;;  %v2094_v1 = vmov 7   ;;  %v2226_v2 = vld [vmem:[#allocation2] sm:$0xff]  ;;  %v1830_v3 = vld [vmem:[#allocation7 + $0x40] sm:$0xff]   ;;  %v98_v47 = vlaneseq }
  0x5a   :  { %1819 = vset.pattern.permute.xlu1 %v2093_v0  ;;  %1817 = vset.pattern.permute.xlu0 %v2094_v1  ;;  %v1831_v4 = vld [vmem:[#allocation7 + $0xc0] sm:$0xff]   ;;  %v2095_v7 = vmov 8   ;;  %v2096_v8 = vmov 6   ;;  %v1834_v9 = vld [vmem:[#allocation7 + $0x48] sm:$0xff]   ;;  %v1838_v13 = vld [vmem:[#allocation7 + $0x50] sm:$0xff]   ;;  %v2097_v14 = vmov 11  }
  0x5b   :  { %164 = vperm.xlu1 %1819, %v2226_v2   ;;  %150 = vperm.xlu0 %1817, %v2226_v2   ;;  %v1832_v5 = vld [vmem:[#allocation7] sm:$0xff]   ;;  %v1835_v10 = vld [vmem:[#allocation7 + $0xc8] sm:$0xff]   ;;  %v2098_v15 = vmov 10   ;;  %v1839_v16 = vld [vmem:[#allocation7 + $0xd0] sm:$0xff]   ;;  %v2099_v21 = vmov 1   ;;  %v2100_v22 = vmov 3  }
  0x5c   :  { %1604 = vmatprep.subr.bf16.mxu0 %v1830_v3  ;;  %1626 = vmatprep.subr.bf16.mxu1 %v1831_v4  ;;  %v1833_v6 = vld [vmem:[#allocation7 + $0x80] sm:$0xff]   ;;  %v1836_v11 = vld [vmem:[#allocation7 + $0x8] sm:$0xff]   ;;  %v1840_v17 = vld [vmem:[#allocation7 + $0x10] sm:$0xff]   ;;  %v2101_v27 = vmov 0   ;;  %v2102_v28 = vmov 4   ;;  %v2103_v33 = vmov 2  }
  0x5d   :  { %1605 = vmatpush3.bf16.msra.mxu0 %v1832_v5  ;;  %1627 = vmatpush3.bf16.msra.mxu1 %v1833_v6  ;;  %v1837_v12 = vld [vmem:[#allocation7 + $0x88] sm:$0xff]   ;;  %v1841_v18 = vld [vmem:[#allocation7 + $0x90] sm:$0xff]   ;;  %v1842_v19 = vld [vmem:[#allocation7 + $0x58] sm:$0xff]   ;;  %v2104_v40 = vmov 5   ;;  %v2240_v48 = vand.u32 127, %v98_v47 }
  0x5e   :  { %1606 = vmatprep.subr.bf16.mxu0 %v1834_v9  ;;  %1628 = vmatprep.subr.bf16.mxu1 %v1835_v10  ;;  %v1843_v20 = vld [vmem:[#allocation7 + $0xd8] sm:$0xff]   ;;  %v1846_v25 = vld [vmem:[#allocation7 + $0x60] sm:$0xff]   ;;  %v1850_v31 = vld [vmem:[#allocation7 + $0x68] sm:$0xff]   ;;  %v2105_v51 = vmov 1.0|1.0  }
  0x5f   :  { %1820 = vset.pattern.permute.xlu1 %v2095_v7  ;;  %1818 = vset.pattern.permute.xlu0 %v2096_v8  ;;  %v1844_v23 = vld [vmem:[#allocation7 + $0x18] sm:$0xff]   ;;  %v1847_v26 = vld [vmem:[#allocation7 + $0xe0] sm:$0xff]   ;;  %v1851_v32 = vld [vmem:[#allocation7 + $0xe8] sm:$0xff]  }
  0x60   :  { %157 = vperm.xlu1 %1820, %v2226_v2   ;;  %143 = vperm.xlu0 %1818, %v2226_v2   ;;  %v1845_v24 = vld [vmem:[#allocation7 + $0x98] sm:$0xff]   ;;  %v1848_v29 = vld [vmem:[#allocation7 + $0x20] sm:$0xff]   ;;  %v1852_v34 = vld [vmem:[#allocation7 + $0x28] sm:$0xff]  }
  0x61   :  { %1607 = vmatpush3.bf16.msra.mxu0 %v1836_v11  ;;  %1629 = vmatpush3.bf16.msra.mxu1 %v1837_v12  ;;  %v1849_v30 = vld [vmem:[#allocation7 + $0xa0] sm:$0xff]   ;;  %v1853_v35 = vld [vmem:[#allocation7 + $0xa8] sm:$0xff]   ;;  %v1854_v36 = vld [vmem:[#allocation7 + $0x70] sm:$0xff]  }
  0x62   :  { %1608 = vmatprep.subr.bf16.mxu0 %v1838_v13  ;;  %1630 = vmatprep.subr.bf16.mxu1 %v1839_v16  ;;  %v1855_v37 = vld [vmem:[#allocation7 + $0xf0] sm:$0xff]   ;;  %v1858_v41 = vld [vmem:[#allocation7 + $0x78] sm:$0xff]   ;;  %v1862_v45 = vld [vmem:[#allocation7 + $0x140] sm:$0xff]  }
  0x63   :  { %v1856_v38 = vld [vmem:[#allocation7 + $0x30] sm:$0xff]   ;;  %v1859_v42 = vld [vmem:[#allocation7 + $0xf8] sm:$0xff]   ;;  %v1863_v46 = vld [vmem:[#allocation5 + $0x40] sm:$0xff]  }
  0x64   :  { %1821 = vset.pattern.permute.xlu1 %v2097_v14  ;;  %1822 = vset.pattern.permute.xlu0 %v2098_v15  ;;  %v1857_v39 = vld [vmem:[#allocation7 + $0xb0] sm:$0xff]   ;;  %v1860_v43 = vld [vmem:[#allocation7 + $0x38] sm:$0xff]   ;;  %v1865_v54 = vld [vmem:[#allocation5] sm:$0xff]  }
  0x65   :  { %178 = vperm.xlu1 %1821, %v2226_v2   ;;  %171 = vperm.xlu0 %1822, %v2226_v2   ;;  %v1861_v44 = vld [vmem:[#allocation7 + $0xb8] sm:$0xff]   ;;  %v1864_v55 = vld [vmem:[#allocation7 + $0x100] sm:$0xff]   ;;  %v1867_v56 = vld [vmem:[#allocation5 + $0x48] sm:$0xff]  }
  0x66   :  { %1609 = vmatpush3.bf16.msra.mxu0 %v1840_v17  ;;  %1631 = vmatpush3.bf16.msra.mxu1 %v1841_v18  ;;  %v1866_v57 = vld [vmem:[#allocation7 + $0x148] sm:$0xff]   ;;  %v1871_v60 = vld [vmem:[#allocation5 + $0x50] sm:$0xff]   ;;  %v1875_v1 = vld [vmem:[#allocation5 + $0x58] sm:$0xff]  }
  0x67   :  { %1610 = vmatprep.subr.bf16.mxu0 %v1842_v19  ;;  %1632 = vmatprep.subr.bf16.mxu1 %v1843_v20  ;;  %v1869_v58 = vld [vmem:[#allocation5 + $0x8] sm:$0xff]   ;;  %v1870_v62 = vld [vmem:[#allocation7 + $0x150] sm:$0xff]   ;;  %v1877_v4 = vld [vmem:[#allocation5 + $0x18] sm:$0xff]  }
  0x68   :  { %v1868_v59 = vld [vmem:[#allocation7 + $0x108] sm:$0xff]   ;;  %v1873_v63 = vld [vmem:[#allocation5 + $0x10] sm:$0xff]   ;;  %v1876_v5 = vld [vmem:[#allocation7 + $0x118] sm:$0xff]  }
  0x69   :  { %1823 = vset.pattern.permute.xlu1 %v2099_v21  ;;  %1825 = vset.pattern.permute.xlu0 %v2100_v22  ;;  %v1872_v0 = vld [vmem:[#allocation7 + $0x110] sm:$0xff]   ;;  %v1879_v6 = vld [vmem:[#allocation5 + $0x60] sm:$0xff]   ;;  %v1883_v10 = vld [vmem:[#allocation5 + $0x68] sm:$0xff]  }
  0x6a   :  { %108 = vperm.xlu1 %1823, %v2226_v2   ;;  %122 = vperm.xlu0 %1825, %v2226_v2   ;;  %v1878_v7 = vld [vmem:[#allocation7 + $0x160] sm:$0xff]   ;;  %v1882_v11 = vld [vmem:[#allocation7 + $0x168] sm:$0xff]   ;;  %v1887_v15 = vld [vmem:[#allocation5 + $0x70] sm:$0xff]  }
  0x6b   :  { %1611 = vmatpush3.bf16.msra.mxu0 %v1844_v23  ;;  %1633 = vmatpush3.bf16.msra.mxu1 %v1845_v24  ;;  %v1881_v8 = vld [vmem:[#allocation5 + $0x20] sm:$0xff]   ;;  %v1884_v12 = vld [vmem:[#allocation5 + $0x28] sm:$0xff]   ;;  %v1886_v16 = vld [vmem:[#allocation7 + $0x170] sm:$0xff]  }
  0x6c   :  { %1612 = vmatprep.subr.bf16.mxu0 %v1846_v25  ;;  %1634 = vmatprep.subr.bf16.mxu1 %v1847_v26  ;;  %v1880_v9 = vld [vmem:[#allocation7 + $0x120] sm:$0xff]   ;;  %v1888_v17 = vld [vmem:[#allocation5 + $0x30] sm:$0xff]   ;;  %v1891_v20 = vld [vmem:[#allocation5 + $0x78] sm:$0xff]  }
  0x6d   :  { %v1889_v19 = vld [vmem:[#allocation7 + $0x130] sm:$0xff]   ;;  %v1890_v22 = vld [vmem:[#allocation7 + $0x178] sm:$0xff]   ;;  %v1895_v25 = vld [vmem:[#allocation5 + $0x140] sm:$0xff]  }
  0x6e   :  { %1824 = vset.pattern.permute.xlu1 %v2101_v27  ;;  %1828 = vset.pattern.permute.xlu0 %v2102_v28  ;;  %v1892_v23 = vld [vmem:[#allocation5 + $0x38] sm:$0xff]   ;;  %v1894_v27 = vld [vmem:[#allocation5 + $0xc0] sm:$0xff]   ;;  %v1915_v47 = vld [vmem:[#allocation5 + $0x168] sm:$0xff]  }
  0x6f   :  { %101 = vperm.xlu1 %1824, %v2226_v2   ;;  %129 = vperm.xlu0 %1828, %v2226_v2   ;;  %v1893_v24 = vld [vmem:[#allocation7 + $0x138] sm:$0xff]  }
  0x70   :  { %1613 = vmatpush3.bf16.msra.mxu0 %v1848_v29  ;;  %1635 = vmatpush3.bf16.msra.mxu1 %v1849_v30  ;;  %v1897_v29 = vld [vmem:[#allocation5 + $0x100] sm:$0xff]  }
  0x71   :  { %1614 = vmatprep.subr.bf16.mxu0 %v1850_v31  ;;  %1636 = vmatprep.subr.bf16.mxu1 %v1851_v32  ;;  %v1896_v30 = vld [vmem:[#allocation5 + $0x80] sm:$0xff]   ;;  %v1899_v31 = vld [vmem:[#allocation5 + $0x148] sm:$0xff]  }
  0x72   :  { %v1898_v32 = vld [vmem:[#allocation5 + $0xc8] sm:$0xff]  }
  0x73   :  { %1826 = vset.pattern.permute.xlu1 %v2103_v33  ;;  %1829 = vset.pattern.permute.xlu0 %v2097_v14  ;;  %v1885_v14 = vld [vmem:[#allocation7 + $0x128] sm:$0xff]  }
  0x74   :  { %115 = vperm.xlu1 %1826, %v2226_v2   ;;  %1615 = vmatpush3.bf16.msra.mxu0 %v1852_v34  ;;  %v1901_v33 = vld [vmem:[#allocation5 + $0x108] sm:$0xff]  }
  0x75   :  { %1637 = vmatpush3.bf16.msra.mxu1 %v1853_v35  ;;  %1616 = vmatprep.subr.bf16.mxu0 %v1854_v36  ;;  %v1900_v34 = vld [vmem:[#allocation5 + $0x88] sm:$0xff]   ;;  %v1903_v35 = vld [vmem:[#allocation5 + $0x150] sm:$0xff]  }
  0x76   :  { %1638 = vmatprep.subr.bf16.mxu1 %v1855_v37  ;;  %v1902_v36 = vld [vmem:[#allocation5 + $0xd0] sm:$0xff]  }
  0x77   :  { %v1905_v37 = vld [vmem:[#allocation5 + $0x110] sm:$0xff]  }
  0x78   :  { %1827 = vset.pattern.permute.xlu1 %v2104_v40  ;;  %1617 = vmatpush3.bf16.msra.mxu0 %v1856_v38  ;;  %v1904_v38 = vld [vmem:[#allocation5 + $0x90] sm:$0xff]   ;;  %v1906_v40 = vld [vmem:[#allocation5 + $0xd8] sm:$0xff]  }
  0x79   :  { %136 = vperm.xlu1 %1827, %v2226_v2   ;;  %1639 = vmatpush3.bf16.msra.mxu1 %v1857_v39  ;;  %v1874_v2 = vld [vmem:[#allocation7 + $0x158] sm:$0xff]  }
  0x7a   :  { %1618 = vmatprep.subr.bf16.mxu0 %v1858_v41  ;;  %1640 = vmatprep.subr.bf16.mxu1 %v1859_v42  ;;  %v1907_v39 = vld [vmem:[#allocation5 + $0x158] sm:$0xff]  }
  0x7b   :  { %v1909_v41 = vld [vmem:[#allocation5 + $0x118] sm:$0xff]  }
  0x7c   :  { %1619 = vmatpush3.bf16.msra.mxu0 %v1860_v43  ;;  %v1908_v42 = vld [vmem:[#allocation5 + $0x98] sm:$0xff]   ;;  %v1911_v43 = vld [vmem:[#allocation5 + $0x160] sm:$0xff]  }
  0x7d   :  { %1641 = vmatpush3.bf16.msra.mxu1 %v1861_v44  ;;  %1648 = vmatprep.subr.bf16.mxu0 %v1862_v45  ;;  %v1910_v44 = vld [vmem:[#allocation5 + $0xe0] sm:$0xff]  }
  0x7e   :  { %1670 = vmatprep.subr.bf16.mxu1 %v1863_v46  ;;  %v1913_v45 = vld [vmem:[#allocation5 + $0x120] sm:$0xff]  }
  0x7f   :  { %v1912_v46 = vld [vmem:[#allocation5 + $0xa0] sm:$0xff]  }
  0xda   :  { %v151_v49 = vpop.permute.xlu0 %150  ;;  %v165_v50 = vpop.permute.xlu1 %164 }
  0xdb   :  { %vm152_vm0 = vcmp.eq.s32.totalorder %v151_v49, %v2240_v48  ;;  %vm166_vm1 = vcmp.eq.s32.totalorder %v165_v50, %v2240_v48  ;;  %v1914_v49 = vld [vmem:[#allocation5 + $0xe8] sm:$0xff]  }
  0xdc   :  { %vm1513_vm2 = vmpackc.low %vm152_vm0, %vm152_vm0  ;;  %v1917_v50 = vld [vmem:[#allocation5 + $0x128] sm:$0xff]  }
  0xdd   :  { %1514 = vmatprep.mubr.msk.bf16.mxu0 %vm1513_vm2, %v2105_v51  ;;  %vm1517_vm3 = vmpackc.low %vm166_vm1, %vm166_vm1 }
  0xde   :  { %1518 = vmatprep.mubr.msk.bf16.mxu1 %vm1517_vm3, %v2105_v51 }
  0xdf   :  { %v158_v52 = vpop.permute.xlu1 %157  ;;  %v144_v53 = vpop.permute.xlu0 %143 }
  0xe0   :  { %vm159_vm4 = vcmp.eq.s32.totalorder %v158_v52, %v2240_v48  ;;  %vm145_vm5 = vcmp.eq.s32.totalorder %v144_v53, %v2240_v48  ;;  %v1916_v52 = vld [vmem:[#allocation5 + $0xa8] sm:$0xff]   ;;  %v1918_v53 = vld [vmem:[#allocation5 + $0x170] sm:$0xff]  }
  0xe1   :  { %vm1519_vm6 = vmpackc.low %vm159_vm4, %vm159_vm4 }
  0xe2   :  { %vm1515_vm7 = vmpackc.low %vm145_vm5, %vm145_vm5  ;;  %1520 = vmatmul.mubr.msk.bf16.vlgmr.msra.gmra.mrb[0].mxu1 %vm1519_vm6, %v2105_v51 }
  0xe3   :  { %1516 = vmatmul.mubr.msk.bf16.vlgmr.msra.gmra.mrb[0].mxu0 %vm1515_vm7, %v2105_v51  ;;  %1671 = vmatpush3.bf16.msra.mxu1 %v1865_v54  ;;  %v1919_v54 = vld [vmem:[#allocation5 + $0xf0] sm:$0xff]  }
  0xe4   :  { %1649 = vmatpush3.bf16.msra.mxu0 %v1864_v55  ;;  %1672 = vmatprep.subr.bf16.mxu1 %v1867_v56  ;;  %v179_v61 = vpop.permute.xlu1 %178  ;;  %v172_v21 = vpop.permute.xlu0 %171  ;;  %v1921_v55 = vld [vmem:[#allocation5 + $0x130] sm:$0xff]  }
  0xe5   :  { %1650 = vmatprep.subr.bf16.mxu0 %v1866_v57  ;;  %vm180_vm8 = vcmp.eq.s32.totalorder %v179_v61, %v2240_v48  ;;  %vm173_vm13 = vcmp.eq.s32.totalorder %v172_v21, %v2240_v48  ;;  %v1920_v56 = vld [vmem:[#allocation5 + $0xb0] sm:$0xff]   ;;  %v1922_v57 = vld [vmem:[#allocation5 + $0x178] sm:$0xff]  }
  0xe6   :  { %vm1521_vm9 = vmpackc.low %vm180_vm8, %vm180_vm8  ;;  %v1924_v61 = vld [vmem:[#allocation5 + $0xb8] sm:$0xff]   ;;  %vm2107_vm8 = vmmov 0  }
  0xe7   :  { %1673 = vmatpush3.bf16.msra.mxu1 %v1869_v58  ;;  %1522 = vmatprep.mubr.msk.bf16.mxu0 %vm1521_vm9, %v2105_v51  ;;  %vm1523_vm0 = vmpackc.low %vm173_vm13, %vm173_vm13  ;;  %v1923_v58 = vld [vmem:[#allocation5 + $0xf8] sm:$0xff]  }
  0xe8   :  { %1651 = vmatpush3.bf16.msra.mxu0 %v1868_v59  ;;  %1674 = vmatprep.subr.bf16.mxu1 %v1871_v60  ;;  %v1925_v60 = vld [vmem:[#allocation5 + $0x138] sm:$0xff]  }
  0xe9   :  { %1652 = vmatprep.subr.bf16.mxu0 %v1870_v62  ;;  %v109_v3 = vpop.permute.xlu1 %108  ;;  %v123_v26 = vpop.permute.xlu0 %122  ;;  %v1926_v62 = vld [vmem:[#allocation8] sm:$0xff]  }
  0xea   :  { %vm110_vm10 = vcmp.eq.s32.totalorder %v109_v3, %v2240_v48  ;;  %vm124_vm15 = vcmp.eq.s32.totalorder %v123_v26, %v2240_v48  ;;  %v1932_v3 = vld [vmem:[#allocation8 + $0x30] sm:$0xff]  }
  0xeb   :  { %1675 = vmatpush3.bf16.msra.mxu1 %v1873_v63  ;;  %vm1573_vm11 = vmpackc.low %vm110_vm10, %vm110_vm10  ;;  %v2106_v63 = vmov 0.0  }
  0xec   :  { %1653 = vmatpush3.bf16.msra.mxu0 %v1872_v0  ;;  %1676 = vmatprep.subr.bf16.mxu1 %v1875_v1  ;;  %vm1577_vm2 = vmpackc.low %vm124_vm15, %vm124_vm15  ;;  %v1927_v0 = vld [vmem:[#allocation8 + $0x8] sm:$0xff]   ;;  %v1929_v1 = vld [vmem:[#allocation8 + $0x18] sm:$0xff]  }
  0xed   :  { %1654 = vmatprep.subr.bf16.mxu0 %v1874_v2  ;;  %1574 = vmatprep.mubr.msk.bf16.mxu1 %vm1573_vm11, %v2105_v51  ;;  %v1931_v2 = vld [vmem:[#allocation8 + $0x28] sm:$0xff]  }
  0xee   :  { %v102_v13 = vpop.permute.xlu1 %101  ;;  %v130_v59 = vpop.permute.xlu0 %129 }
  0xef   :  { %1677 = vmatpush3.bf16.msra.mxu1 %v1877_v4  ;;  %vm103_vm12 = vcmp.eq.s32.totalorder %v102_v13, %v2240_v48  ;;  %vm131_vm4 = vcmp.eq.s32.totalorder %v130_v59, %v2240_v48  ;;  %v1933_v4 = vld [vmem:[#allocation8 + $0x38] sm:$0xff]  }
  0xf0   :  { %1655 = vmatpush3.bf16.msra.mxu0 %v1876_v5  ;;  %1678 = vmatprep.subr.bf16.mxu1 %v1879_v6  ;;  %vm1575_vm14 = vmpackc.low %vm103_vm12, %vm103_vm12  ;;  %v1934_v5 = vld [vmem:[#allocation10] sm:$0xff]   ;;  %v1935_v6 = vld [vmem:[#allocation10 + $0x8] sm:$0xff]  }
  0xf1   :  { %1656 = vmatprep.subr.bf16.mxu0 %v1878_v7  ;;  %vm1583_vm6 = vmpackc.low %vm131_vm4, %vm131_vm4  ;;  %v1936_v7 = vld [vmem:[#allocation10 + $0x10] sm:$0xff]  }
  0xf3   :  { %1679 = vmatpush3.bf16.msra.mxu1 %v1881_v8  ;;  %v2254_v18 = vpop.permute.xlu1 %115  ;;  %v1937_v8 = vld [vmem:[#allocation10 + $0x18] sm:$0xff]  }
  0xf4   :  { %1657 = vmatpush3.bf16.msra.mxu0 %v1880_v9  ;;  %1680 = vmatprep.subr.bf16.mxu1 %v1883_v10  ;;  %vm117_vm5 = vcmp.eq.s32.totalorder %v2254_v18, %v2240_v48  ;;  %v1938_v9 = vld [vmem:[#allocation10 + $0x20] sm:$0xff]   ;;  %v1939_v10 = vld [vmem:[#allocation10 + $0x28] sm:$0xff]  }
  0xf5   :  { %1658 = vmatprep.subr.bf16.mxu0 %v1882_v11  ;;  %vm1579_vm7 = vmpackc.low %vm117_vm5, %vm117_vm5 }
  0xf7   :  { %1681 = vmatpush3.bf16.msra.mxu1 %v1884_v12 }
  0xf8   :  { %1659 = vmatpush3.bf16.msra.mxu0 %v1885_v14  ;;  %1682 = vmatprep.subr.bf16.mxu1 %v1887_v15  ;;  %v137_v28 = vpop.permute.xlu1 %136 }
  0xf9   :  { %1660 = vmatprep.subr.bf16.mxu0 %v1886_v16  ;;  %vm138_vm1 = vcmp.eq.s32.totalorder %v137_v28, %v2240_v48  ;;  %v1928_v48 = vld [vmem:[#allocation8 + $0x10] sm:$0xff]  }
  0xfa   :  { %vm1581_vm3 = vmpackc.low %vm138_vm1, %vm138_vm1 }
  0xfb   :  { %1683 = vmatpush3.bf16.msra.mxu1 %v1888_v17 }
  0xfc   :  { %1661 = vmatpush3.bf16.msra.mxu0 %v1889_v19  ;;  %1684 = vmatprep.subr.bf16.mxu1 %v1891_v20 }
  0xfd   :  { %1662 = vmatprep.subr.bf16.mxu0 %v1890_v22 }
  0xff   :  { %1685 = vmatpush3.bf16.msra.mxu1 %v1892_v23 }
 0x100   :  { %1663 = vmatpush3.bf16.msra.mxu0 %v1893_v24  ;;  %1714 = vmatprep.subr.bf16.mxu1 %v1895_v25 }
 0x101   :  { %1692 = vmatprep.subr.bf16.mxu0 %v1894_v27 }
 0x102   :  { %1576 = vmatmul.mubr.msk.bf16.vlgmr.msra.gmra.mrb[4].mxu1 %vm1575_vm14, %v2105_v51 }
 0x103   :  { %1524 = vmatmul.mubr.msk.bf16.vlgmr.msra.gmra.mrb[4].mxu0 %vm1523_vm0, %v2105_v51  ;;  %1715 = vmatpush3.bf16.msra.mxu1 %v1897_v29 }
 0x104   :  { %1693 = vmatpush3.bf16.msra.mxu0 %v1896_v30  ;;  %1716 = vmatprep.subr.bf16.mxu1 %v1899_v31 }
 0x105   :  { %1694 = vmatprep.subr.bf16.mxu0 %v1898_v32  ;;  %1578 = vmatprep.mubr.msk.bf16.mxu0 %vm1577_vm2, %v2105_v51 }
 0x106   :  { %1582 = vmatprep.mubr.msk.bf16.mxu1 %vm1581_vm3, %v2105_v51 }
 0x107   :  { %1717 = vmatpush3.bf16.msra.mxu1 %v1901_v33 }
 0x108   :  { %1695 = vmatpush3.bf16.msra.mxu0 %v1900_v34  ;;  %1718 = vmatprep.subr.bf16.mxu1 %v1903_v35 }
 0x109   :  { %1696 = vmatprep.subr.bf16.mxu0 %v1902_v36 }
 0x10b   :  { %1719 = vmatpush3.bf16.msra.mxu1 %v1905_v37 }
 0x10c   :  { %1697 = vmatpush3.bf16.msra.mxu0 %v1904_v38  ;;  %1720 = vmatprep.subr.bf16.mxu1 %v1907_v39 }
 0x10d   :  { %1698 = vmatprep.subr.bf16.mxu0 %v1906_v40 }
 0x10f   :  { %1721 = vmatpush3.bf16.msra.mxu1 %v1909_v41 }
 0x110   :  { %1699 = vmatpush3.bf16.msra.mxu0 %v1908_v42  ;;  %1722 = vmatprep.subr.bf16.mxu1 %v1911_v43 }
 0x111   :  { %1700 = vmatprep.subr.bf16.mxu0 %v1910_v44 }
 0x113   :  { %1723 = vmatpush3.bf16.msra.mxu1 %v1913_v45  ;;  %v1585_v45 = vld [vmem:[%s2311_s3] ss:$0 sm:$0xff] }
 0x114   :  { %1701 = vmatpush3.bf16.msra.mxu0 %v1912_v46  ;;  %1724 = vmatprep.subr.bf16.mxu1 %v1915_v47 }
 0x115   :  { %1702 = vmatprep.subr.bf16.mxu0 %v1914_v49 }
 0x117   :  { %1725 = vmatpush3.bf16.msra.mxu1 %v1917_v50 }
 0x118   :  { %1703 = vmatpush3.bf16.msra.mxu0 %v1916_v52  ;;  %1726 = vmatprep.subr.bf16.mxu1 %v1918_v53  ;;  %v1940_v52 = vld [vmem:[#allocation10 + $0x30] sm:$0xff]   ;;  %v1941_v53 = vld [vmem:[#allocation10 + $0x38] sm:$0xff]  }
 0x119   :  { %1704 = vmatprep.subr.bf16.mxu0 %v1919_v54  ;;  %v1586_v54 = vld [vmem:[%s2313_s5] ss:$0 sm:$0xff]  ;;  %s2108_s5 = smov [#allocation11]  }
 0x11a   :  { %s1442_s24 = sshll.u32 %s2108_s5, 4  ;;  %s1443_s24 = int_to_ptr.vmem [resolvable:$true] %s1442_s24 }
 0x11b   :  { %1727 = vmatpush3.bf16.msra.mxu1 %v1921_v55  ;;  %p2061_p13 = scmp.lt.s32.totalorder %s1443_s24, %s1443_s24 }
 0x11c   :  { %1705 = vmatpush3.bf16.msra.mxu0 %v1920_v56  ;;  %1728 = vmatprep.subr.bf16.mxu1 %v1922_v57 }
 0x11d   :  { %1706 = vmatprep.subr.bf16.mxu0 %v1923_v58 }
 0x11f   :  { %1729 = vmatpush3.bf16.msra.mxu1 %v1925_v60 }
 0x120   :  { %1707 = vmatpush3.bf16.msra.mxu0 %v1924_v61  ;;  %1774 = vmatprep.subr.bf16.mxu1 %v2106_v63 }
 0x121   :  { %1754 = vmatprep.subr.bf16.mxu0 %v2106_v63 }
 0x122   :  { %1584 = vmatmul.mubr.msk.bf16.vlgmr.msra.gmra.mrb[8].mxu1 %vm1583_vm6, %v2105_v51 }
 0x123   :  { %1580 = vmatmul.mubr.msk.bf16.vlgmr.msra.gmra.mrb[8].mxu0 %vm1579_vm7, %v2105_v51  ;;  %v1930_v51 = vld [vmem:[#allocation8 + $0x20] sm:$0xff]   ;;  %1790 = vmatprep.mubr.msk.bf16.mxu1 %vm2107_vm8, %v2106_v63 }
 0x124   :  { %1755 = vmatpush3.bf16.msra.mxu0 %v1926_v62  ;;  %1770 = vmatprep.mubr.msk.bf16.mxu0 %vm2107_vm8, %v2106_v63  ;;  %v1595_v62 = vld [vmem:[%s2315_s7] ss:$0 sm:$0xff]  ;;  %s2056_s7 = scalar_lea.vmem %s1443_s24, 128 }
 0x125   :  { %1756 = vmatprep.subr.bf16.mxu0 %v2106_v63  ;;  %1775 = vmatpush3.bf16.msra.mxu1 %v1934_v5  ;;  %p2057_p12 = scmp.ne.s32.totalorder %s1443_s24, %s2056_s7  ;;  %p2062_p0 = scmp.lt.s32.totalorder %s2056_s7, %s2056_s7 }
 0x126   :  { %1776 = vmatprep.subr.bf16.mxu1 %v2106_v63 }
 0x127   :  { %p2063_p1 = por %p2062_p0, %p2061_p13 }
 0x128   :  { %1757 = vmatpush3.bf16.msra.mxu0 %v1927_v0 }
 0x129   :  { %1758 = vmatprep.subr.bf16.mxu0 %v2106_v63  ;;  %1777 = vmatpush3.bf16.msra.mxu1 %v1935_v6  ;;  %p2064_p2 = pnand %p2063_p1, %p2057_p12 }
 0x12a   :  { %1778 = vmatprep.subr.bf16.mxu1 %v2106_v63 }
 0x12c   :  { %1759 = vmatpush3.bf16.msra.mxu0 %v1928_v48 }
 0x12d   :  { %1760 = vmatprep.subr.bf16.mxu0 %v2106_v63  ;;  %1779 = vmatpush3.bf16.msra.mxu1 %v1936_v7 }
 0x12e   :  { %1780 = vmatprep.subr.bf16.mxu1 %v2106_v63 }
 0x130   :  { %1761 = vmatpush3.bf16.msra.mxu0 %v1929_v1 }
 0x131   :  { %1762 = vmatprep.subr.bf16.mxu0 %v2106_v63  ;;  %1781 = vmatpush3.bf16.msra.mxu1 %v1937_v8 }
 0x132   :  { %1782 = vmatprep.subr.bf16.mxu1 %v2106_v63 }
 0x134   :  { %1763 = vmatpush3.bf16.msra.mxu0 %v1930_v51 }
 0x135   :  { %1764 = vmatprep.subr.bf16.mxu0 %v2106_v63  ;;  %1783 = vmatpush3.bf16.msra.mxu1 %v1938_v9 }
 0x136   :  { %1784 = vmatprep.subr.bf16.mxu1 %v2106_v63 }
 0x138   :  { %1765 = vmatpush3.bf16.msra.mxu0 %v1931_v2 }
 0x139   :  { %1766 = vmatprep.subr.bf16.mxu0 %v2106_v63  ;;  %1785 = vmatpush3.bf16.msra.mxu1 %v1939_v10 }
 0x13a   :  { %1786 = vmatprep.subr.bf16.mxu1 %v2106_v63 }
 0x13c   :  { %1767 = vmatpush3.bf16.msra.mxu0 %v1932_v3 }
 0x13d   :  { %1768 = vmatprep.subr.bf16.mxu0 %v2106_v63  ;;  %1787 = vmatpush3.bf16.msra.mxu1 %v1940_v52 }
 0x13e   :  { %1788 = vmatprep.subr.bf16.mxu1 %v2106_v63 }
 0x140   :  { %1769 = vmatpush3.bf16.msra.mxu0 %v1933_v4 }
 0x141   :  { %1789 = vmatpush3.bf16.msra.mxu1 %v1941_v53 }
 0x1b5   :  { %v1642_v11 = vpop.f32.mrb[0].mxu1 }
 0x1b6   :  { %v1620_v12 = vpop.f32.mrb[0].mxu0  ;;  %v1643_v13 = vpop.f32.mrb[1].mxu1 }
 0x1b7   :  { %v1621_v14 = vpop.f32.mrb[1].mxu0  ;;  %v1644_v15 = vadd.f32 %v1643_v13, %v1642_v11  ;;  %v1645_v16 = vpop.f32.mrb[2].mxu1 }
 0x1b8   :  { %v1622_v17 = vadd.f32 %v1621_v14, %v1620_v12  ;;  %v1623_v18 = vpop.f32.mrb[2].mxu0  ;;  %v1646_v19 = vpop.f32.mrb[3].mxu1 }
 0x1b9   :  { %v1624_v20 = vpop.f32.mrb[3].mxu0 }
 0x1ba   :  { %v739_v21 = vadd.f32 %v1644_v15, %v1622_v17 }
 0x1d5   :  { %v1686_v22 = vpop.f32.mrb[4].mxu1 }
 0x1d6   :  { %v1664_v23 = vpop.f32.mrb[4].mxu0  ;;  %v1687_v24 = vpop.f32.mrb[5].mxu1 }
 0x1d7   :  { %v1665_v25 = vpop.f32.mrb[5].mxu0  ;;  %v1688_v26 = vadd.f32 %v1687_v24, %v1686_v22  ;;  %v1689_v27 = vpop.f32.mrb[6].mxu1 }
 0x1d8   :  { %v1666_v28 = vadd.f32 %v1665_v25, %v1664_v23  ;;  %v1667_v29 = vpop.f32.mrb[6].mxu0  ;;  %v1690_v30 = vpop.f32.mrb[7].mxu1 }
 0x1d9   :  { %v1668_v31 = vpop.f32.mrb[7].mxu0 }
 0x1da   :  { %v779_v32 = vadd.f32 %v1666_v28, %v739_v21 }
 0x1dc   :  { %v1107_v33 = vadd.f32 %v1688_v26, %v779_v32 }
 0x1f5   :  { %v1730_v34 = vpop.f32.mrb[8].mxu1 }
 0x1f6   :  { %v1708_v35 = vpop.f32.mrb[8].mxu0  ;;  %v1731_v36 = vpop.f32.mrb[9].mxu1 }
 0x1f7   :  { %v1709_v37 = vpop.f32.mrb[9].mxu0  ;;  %v1732_v38 = vadd.f32 %v1731_v36, %v1730_v34  ;;  %v1733_v39 = vpop.f32.mrb[10].mxu1 }
 0x1f8   :  { %v1710_v40 = vadd.f32 %v1709_v37, %v1708_v35  ;;  %v1711_v41 = vpop.f32.mrb[10].mxu0  ;;  %v1734_v42 = vpop.f32.mrb[11].mxu1 }
 0x1f9   :  { %v1712_v43 = vpop.f32.mrb[11].mxu0 }
 0x1fa   :  { %v1147_v44 = vadd.f32 %v1710_v40, %v1107_v33 }
 0x1fc   :  { %v1187_v46 = vadd.f32 %v1732_v38, %v1147_v44 }
 0x1fe   :  { %v1199_v47 = vadd.f32 %v1585_v45, %v1187_v46 }
 0x200   :  { %v1200_v49 = vmax.f32 %v1199_v47, 0.0 }
 0x202   :  { %v1201_v50 = vpack.c.bf16 %v1200_v49, %v1200_v49 }
 0x204   :  { %1771 = vmatmul.mubr.bf16.vlgmr.msra.gmra.mrb[12].mxu0 %v1201_v50 }
 0x2d7   :  { %v1307_v55 = vpop.f32.mrb[12].mxu0 }
 0x2d8   :  { %v1308_v56 = vadd.f32 %v1586_v54, %v1307_v55  ;;  %v1772_v57 = vpop.f32.mrb[13].mxu0 }
 0x2d9   :  { %v1310_v58 = vpop.f32.mrb[14].mxu0 }
 0x2da   :  { %v1313_v59 = vmax.f32 %v1308_v56, 0.0  ;;  %v1773_v60 = vpop.f32.mrb[15].mxu0 }
 0x2dc   :  { %v1314_v61 = vpack.c.bf16 %v1313_v59, %v1313_v59 }
 0x2de   :  { %1791 = vmatmul.mubr.bf16.vlgmr.msra.gmra.mrb[12].mxu1 %v1314_v61 }
 0x3b1   :  { %v1420_v0 = vpop.f32.mrb[12].mxu1 }
 0x3b2   :  { %v1421_v63 = vadd.f32 %v1595_v62, %v1420_v0  ;;  %v1792_v48 = vpop.f32.mrb[13].mxu1 }
 0x3b3   :  { %v1423_v1 = vpop.f32.mrb[14].mxu1 }
 0x3b4   :  { %1426 = vmax.xlane.f32.xlu1 %v1421_v63  ;;  %v1793_v51 = vpop.f32.mrb[15].mxu1 }
 0x441   :  { %v1427_v2 = vpop.xlane.xlu1 %1426 }
 0x442   :  { %v1428_v3 = vsub.f32 %v1421_v63, %v1427_v2 }
 0x444   :  { %v1429_v4 = vmul.f32 1.442695, %v1428_v3 }
 0x446   :  { %1942 = vpow2.f32 %v1429_v4 }
 0x450   :  { %v1943_v5 = vpop.eup %1942 }
 0x451   :  { %1431 = vadd.xlane.f32.xlu0 %v1943_v5 }
 0x4de   :  { %v1432_v6 = vpop.xlane.xlu0 %1431 }
 0x4df   :  { %1944 = vrcp.f32 %v1432_v6 }
 0x4e9   :  { %v1945_v7 = vpop.eup %1944 }
 0x4ea   :  { %v1434_v8 = vmul.f32 %v1945_v7, %v1943_v5 }
 0x4ec   :  { %1435 = vst [vmem:[#allocation11] sm:$0xff] %v1434_v8 }
 0x4ed   :  { %2067 = shalt.err (!%p2064_p2)
}
 0x4ee   :  { %s2068_s27 = scalar_lea.hbm %s2316_s8, 128 }
 0x4ef   :  { %p2069_p3 = scmp.ne.s32.totalorder %s2316_s8, %s2068_s27  ;;  %p2072_p4 = scmp.lt.u32.totalorder %s2068_s27, %s2316_s8 }
 0x4f1   :  { %p2074_p5 = pnand %p2072_p4, %p2069_p3 }
 0x4f3   :  { %2077 = shalt.err (!%p2074_p5)
}
 0x4f4   :  { %1445 = dma.vmem_to_hbm [thread:$0]  %s1443_s24, 128, %s2316_s8, [#allocation4]  }
 0x4f5   :  { %2084 = dma.done.wait [#allocation4], 128  }
 0x4f6   :  { %2085 = vsyncadd [#allocation4], 4294967168 }
 0x4f7   :  { %1449 = vsyncpa [#allocation3], 1 }
 0x4f8   :  { %1450 = vsyncpa [#allocation6], 1 }
 0x4f9   :  { %1451 = vsyncpa [#allocation9], 1 }
 0x4fa   :  { %1452 = vsyncpa [#allocation4], 1 }

</bundles_post_ra>
